<compile_context>
chip_gen: v6e
topology: v6e:2x2x1
jax: 0.10.0
libtpu: 0.0.40
codegen_flags: <defaults>
</compile_context>

<pallas_src>
import functools

import jax
import jax.numpy as jnp
from jax import lax
from jax.experimental import pallas as pl
from jax.experimental.pallas import tpu as pltpu


def _round_up(n, m):
    return ((n + m - 1) // m) * m


def _chip_config():
    """(vmem budget bytes, # TensorCores to shard the 'parallel' grid axis over)."""
    kind = ""
    try:
        kind = jax.devices()[0].device_kind.lower()
    except Exception:
        pass
    if "v7" in kind or "7x" in kind:
        return 52 * 1024 * 1024, 2      # 64 MiB physical per TC -> leave headroom; 2 TCs
    if "v6" in kind or "v5" in kind:
        return 100 * 1024 * 1024, 1     # 128 MiB physical, single TC -> use most of it
    return 64 * 1024 * 1024, 1          # unknown generation: conservative default


def _pick_block_rows(B, Bp, Dp, mm_bytes, vmem_budget, num_tc):
    """Anchor lanes per grid step, derived from a VMEM budget (multiple of 128)."""
    # Resident (single-buffered): full positive set + ||p||^2.
    resident = Bp * Dp * mm_bytes + Bp * 4
    avail = max(vmem_budget - resident - (8 << 20), 4 << 20)
    # Per anchor lane: double-buffered lhs row + scalars/output, and ~6 live (Bp, R)
    # f32/i32 mining temporaries (matmul result, d2', masks, iota, select).
    per_lane = 2 * Dp * mm_bytes + 6 * Bp * 4 + 64
    r = int(avail // per_lane)
    r = max(128, (r // 128) * 128)
    if num_tc > 1:
        # Keep at least num_tc grid steps so "parallel" can shard across TensorCores.
        r = min(r, max(128, _round_up((B + num_tc - 1) // num_tc, 128)))
    r = min(r, _round_up(B, 128))
    return r


def _triplet_kernel(lhs_ref, scal_ref, rhs_ref, psq_ref, hinge_ref):
    """One lane-block of anchors against the full (resident) positive set.

    lhs_ref  : (R, Dp)   -2 * (normalize(anchor) + eps), zero padded past D
    scal_ref : (4, R)    per-anchor scalars [pos_thr, hi_thr, c1, c2] (built in the wrapper)
    rhs_ref  : (Bp, Dp)  normalize(positive) -- the negative candidates (resident)
    psq_ref  : (Bp, 1)   ||p_j||^2, +inf on padded candidate rows (resident)
    hinge_ref: (1, R)    relu(pos_dist^2 - neg_dist^2 + margin) per anchor
    """
    # Single MXU pass: cross[j, i] = -2 * (a_i + eps) . p_j                      (Bp, R)
    cross = lax.dot_general(rhs_ref[...], lhs_ref[...], (((1,), (1,)), ((), ())),
                            preferred_element_type=jnp.float32)
    # d2'[j, i] = ||a_i + eps - p_j||^2 - ||a_i + eps||^2  (the ||a||^2 shift is folded
    # into the per-row thresholds below, so it never touches the (Bp, R) tile).
    d2p = cross + psq_ref[...]

    scal = scal_ref[...]
    pos_thr = scal[0:1]   # pos_d2 - ||a+eps||^2
    hi_thr = scal[1:2]    # (pos_dist + mining_margin)^2 - ||a+eps||^2
    c1 = scal[2:3]        # pos_d2 + margin - ||a+eps||^2      (semihard branch)
    c2 = scal[3:4]        # pos_d2 + margin - fallback_d2      (random-fallback branch)

    bp, r = d2p.shape
    anchor_ids = pl.program_id(0) * r + lax.broadcasted_iota(jnp.int32, (1, r), 1)
    cand_ids = lax.broadcasted_iota(jnp.int32, (bp, r), 0)

    # Semihard mining in shifted-squared space: the minimum of {d2' : d2 > pos_d2, j != i}
    # is the hardest semihard candidate iff it lies below the (pos_dist + mining_margin)^2
    # cap; otherwise no semihard candidate exists.  Padded candidate rows carry +inf.
    sel = jnp.where((d2p > pos_thr) & (cand_ids != anchor_ids), d2p, jnp.inf)
    neg_min = jnp.min(sel, axis=0, keepdims=True)            # (1, R)
    has_cand = neg_min < hi_thr

    # TODO(synk): torch random.choice()s among the semihard candidates; we take the hardest
    # (minimum-distance) one -- there is no clean data-dependent RNG choice inside the kernel.
    hinge_ref[...] = jnp.maximum(jnp.where(has_cand, c1 - neg_min, c2), 0.0)


def triplet_loss(x, key, *, mining_margin=0.1, margin=0.2, block_rows=None,
                 vmem_limit_bytes=None):
    """Pallas port of LossFunction.forward.  x: (B, 2, D) float32; key: PRNG key."""
    B, pair, D = x.shape
    assert pair == 2, "expected x of shape (batch, 2, dim)"
    eps = jnp.float32(1e-6)   # F.pairwise_distance eps

    a = x[:, 0, :].astype(jnp.float32)
    p = x[:, 1, :].astype(jnp.float32)

    # F.normalize(x, p=2, dim=1) == x / max(||x||_2, 1e-12).
    def l2norm(v):
        return v / jnp.maximum(jnp.sqrt(jnp.sum(v * v, axis=1, keepdims=True)), 1e-12)

    a_n = l2norm(a)
    p_n = l2norm(p)
    ae = a_n + eps                                   # pairwise_distance adds eps to x1 - x2

    pos_d2 = jnp.sum((ae - p_n) ** 2, axis=1)        # (B,) anchor-positive distance^2
    pos_dist = jnp.sqrt(pos_d2)
    a_sq = jnp.sum(ae * ae, axis=1)                  # (B,)
    p_sq = jnp.sum(p_n * p_n, axis=1)                # (B,)

    # torch falls back to random.choice(range(B)) when a row has no semihard candidate;
    # draw the index host-side and evaluate its distance exactly in the wrapper.
    fb = jax.random.randint(key, (B,), 0, B, dtype=jnp.int32)
    fb_d2 = jnp.sum((ae - p_n[fb]) ** 2, axis=1)     # (B,)

    mm = jnp.float32(mining_margin)
    mg = jnp.float32(margin)
    pos_thr = pos_d2 - a_sq                          # d2' > pos_thr  <=>  d2 > pos_d2
    hi_thr = (pos_dist + mm) ** 2 - a_sq             # d2' < hi_thr   <=>  d2 < (pos+mm)^2
    c1 = pos_d2 + mg - a_sq                          # hinge argument, semihard branch
    c2 = pos_d2 + mg - fb_d2                         # hinge argument, fallback branch
    scal = jnp.stack([pos_thr, hi_thr, c1, c2], axis=0)   # (4, B)

    # Padding: D -> plain 128 multiple (no spare column), candidates -> sublane multiple,
    # anchors -> a lane multiple of the block size.
    Dp = max(128, _round_up(D, 128))
    Bp = _round_up(B, 8)
    mm_dtype = jnp.bfloat16 if Dp >= 512 else jnp.float32   # native MXU bf16 once matmul-bound
    mm_bytes = 2 if mm_dtype == jnp.bfloat16 else 4

    vmem_budget, num_tc = _chip_config()
    if vmem_limit_bytes is None:
        vmem_limit_bytes = vmem_budget
    if block_rows is None:
        block_rows = _pick_block_rows(B, Bp, Dp, mm_bytes, vmem_budget, num_tc)
    else:
        block_rows = max(128, _round_up(block_rows, 128))
    Bl = _round_up(B, block_rows)
    grid = (Bl // block_rows,)

    lhs = jnp.pad(-2.0 * ae, ((0, Bl - B), (0, Dp - D))).astype(mm_dtype)     # (Bl, Dp)
    rhs = jnp.pad(p_n, ((0, Bp - B), (0, Dp - D))).astype(mm_dtype)           # (Bp, Dp)
    psq = jnp.pad(p_sq, (0, Bp - B), constant_values=jnp.inf).reshape(Bp, 1)  # (Bp, 1)
    scal = jnp.pad(scal, ((0, 0), (0, Bl - B)))                               # (4, Bl)

    def run(single_buffer_resident):
        if single_buffer_resident:
            # Constant-index resident blocks: the second pipeline buffer is pure waste.
            rhs_spec = pl.BlockSpec((Bp, Dp), lambda i: (0, 0), pipeline_mode=pl.Buffered(1))
            psq_spec = pl.BlockSpec((Bp, 1), lambda i: (0, 0), pipeline_mode=pl.Buffered(1))
        else:
            rhs_spec = pl.BlockSpec((Bp, Dp), lambda i: (0, 0))
            psq_spec = pl.BlockSpec((Bp, 1), lambda i: (0, 0))
        return pl.pallas_call(
            _triplet_kernel,
            out_shape=jax.ShapeDtypeStruct((1, Bl), jnp.float32),
            grid=grid,
            in_specs=[
                pl.BlockSpec((block_rows, Dp), lambda i: (i, 0)),   # anchor lane block
                pl.BlockSpec((4, block_rows), lambda i: (0, i)),    # per-anchor scalars
                rhs_spec,                                           # all positives (resident)
                psq_spec,                                           # ||p||^2 (resident)
            ],
            out_specs=pl.BlockSpec((1, block_rows), lambda i: (0, i)),  # lane-dense hinge
            compiler_params=pltpu.CompilerParams(
                dimension_semantics=("parallel",),   # anchor blocks independent -> 2 TCs on v7x
                vmem_limit_bytes=int(vmem_limit_bytes),
            ),
        )(lhs, scal, rhs, psq)

    try:
        hinge = run(True)
    except Exception:
        # pipeline_mode / pl.Buffered(1) not supported by this jax build -> default buffering.
        hinge = run(False)

    return jnp.sum(hinge[0, :B]) / B


if __name__ == "__main__":
    root = jax.random.PRNGKey(0)
    kx, kneg = jax.random.split(root)
    B, D = 8, 32
    x = jax.random.normal(kx, (B, 2, D), dtype=jnp.float32)

    loss = triplet_loss(x, kneg, mining_margin=0.1, margin=0.2)
    loss = jax.block_until_ready(loss)
    assert bool(jnp.isfinite(loss)), f"non-finite loss: {loss}"
    print("KERNEL_OK")
</pallas_src>

<mosaic_0001>
module attributes {stable_mosaic.version = 11 : i64} {
  func.func @_triplet_kernel(%arg0: i32, %arg1: memref<128x128xf32, #tpu.memory_space<vmem>>, %arg2: memref<4x128xf32, #tpu.memory_space<vmem>>, %arg3: memref<8x128xf32, #tpu.memory_space<vmem>>, %arg4: memref<8x1xf32, #tpu.memory_space<vmem>>, %arg5: memref<1x128xf32, #tpu.memory_space<vmem>>) attributes {dimension_semantics = [#tpu.dimension_semantics<parallel>], iteration_bounds = array<i64: 1>, scalar_prefetch = 0 : i64, scratch_operands = 0 : i64, tpu.core_type = #tpu.core_type<tc>, window_params = [{transform_indices = @transform_0, window_bounds = array<i64: 128, 128>}, {transform_indices = @transform_1, window_bounds = array<i64: 4, 128>}, {pipeline_mode = #tpu.pipeline_mode<synchronous>, transform_indices = @transform_2, window_bounds = array<i64: 8, 128>}, {pipeline_mode = #tpu.pipeline_mode<synchronous>, transform_indices = @transform_3, window_bounds = array<i64: 8, 1>}, {transform_indices = @transform_4, window_bounds = array<i64: 1, 128>}]} {
    %c0 = arith.constant 0 : index
    %c0_0 = arith.constant 0 : index
    %0 = vector.load %arg3[%c0, %c0_0] : memref<8x128xf32, #tpu.memory_space<vmem>>, vector<8x128xf32>
    %c0_1 = arith.constant 0 : index
    %c0_2 = arith.constant 0 : index
    %1 = vector.load %arg1[%c0_1, %c0_2] : memref<128x128xf32, #tpu.memory_space<vmem>>, vector<128x128xf32>
    %cst = arith.constant dense<0.000000e+00> : vector<8x128xf32>
    %2 = tpu.matmul %0, %1, %cst {dimension_numbers = #tpu.dot_dimension_numbers<[1], [1], [0], [0], [0, 0, 1, 0], [], []>} : vector<8x128xf32>, vector<128x128xf32>, vector<8x128xf32> -> vector<8x128xf32>
    %c0_3 = arith.constant 0 : index
    %c0_4 = arith.constant 0 : index
    %3 = vector.load %arg4[%c0_3, %c0_4] : memref<8x1xf32, #tpu.memory_space<vmem>>, vector<8x1xf32>
    %4 = vector.broadcast %3 : vector<8x1xf32> to vector<8x128xf32>
    %5 = arith.addf %2, %4 : vector<8x128xf32>
    %c0_5 = arith.constant 0 : index
    %c0_6 = arith.constant 0 : index
    %6 = vector.load %arg2[%c0_5, %c0_6] : memref<4x128xf32, #tpu.memory_space<vmem>>, vector<4x128xf32>
    %7 = vector.extract_strided_slice %6 {offsets = [0, 0], sizes = [1, 128], strides = [1, 1]} : vector<4x128xf32> to vector<1x128xf32>
    %8 = vector.extract_strided_slice %6 {offsets = [1, 0], sizes = [1, 128], strides = [1, 1]} : vector<4x128xf32> to vector<1x128xf32>
    %9 = vector.extract_strided_slice %6 {offsets = [2, 0], sizes = [1, 128], strides = [1, 1]} : vector<4x128xf32> to vector<1x128xf32>
    %10 = vector.extract_strided_slice %6 {offsets = [3, 0], sizes = [1, 128], strides = [1, 1]} : vector<4x128xf32> to vector<1x128xf32>
    %c128_i32 = arith.constant 128 : i32
    %11 = arith.muli %arg0, %c128_i32 : i32
    %12 = tpu.iota {dimensions = array<i32: 1>} : vector<1x128xi32>
    %13 = vector.broadcast %11 : i32 to vector<1x128xi32>
    %14 = arith.addi %13, %12 : vector<1x128xi32>
    %15 = tpu.iota {dimensions = array<i32: 0>} : vector<8x128xi32>
    %16 = vector.broadcast %7 : vector<1x128xf32> to vector<8x128xf32>
    %17 = arith.cmpf ogt, %5, %16 : vector<8x128xf32>
    %18 = vector.broadcast %14 : vector<1x128xi32> to vector<8x128xi32>
    %19 = arith.cmpi ne, %15, %18 : vector<8x128xi32>
    %20 = arith.andi %17, %19 : vector<8x128xi1>
    %cst_7 = arith.constant 0x7F800000 : f32
    %21 = vector.broadcast %cst_7 : f32 to vector<8x128xf32>
    %22 = arith.select %20, %5, %21 : vector<8x128xi1>, vector<8x128xf32>
    %cst_8 = arith.constant dense<0x7F800000> : vector<128xf32>
    %23 = vector.multi_reduction <minimumf>, %22, %cst_8 [0] : vector<8x128xf32> to vector<128xf32>
    %24 = vector.shape_cast %23 : vector<128xf32> to vector<1x128xf32>
    %25 = arith.cmpf olt, %24, %8 : vector<1x128xf32>
    %26 = arith.subf %9, %24 : vector<1x128xf32>
    %27 = arith.select %25, %26, %10 : vector<1x128xi1>, vector<1x128xf32>
    %cst_9 = arith.constant 0.000000e+00 : f32
    %28 = vector.broadcast %cst_9 : f32 to vector<1x128xf32>
    %29 = arith.maximumf %27, %28 : vector<1x128xf32>
    %c0_10 = arith.constant 0 : index
    %c0_11 = arith.constant 0 : index
    %30 = vector.load %arg5[%c0_10, %c0_11] : memref<1x128xf32, #tpu.memory_space<vmem>>, vector<1x128xf32>
    tpu.vector_store %arg5[%c0_10, %c0_11], %29 {strides = array<i32>} : memref<1x128xf32, #tpu.memory_space<vmem>>, vector<1x128xf32>,
    return
  }
  func.func @transform_0(%arg0: i32) -> (i32, i32) {
    %c0_i32 = arith.constant 0 : i32
    %c0_i32_0 = arith.constant 0 : i32
    return %arg0, %c0_i32 : i32, i32
  }
  func.func @transform_1(%arg0: i32) -> (i32, i32) {
    %c0_i32 = arith.constant 0 : i32
    %c0_i32_0 = arith.constant 0 : i32
    return %c0_i32, %arg0 : i32, i32
  }
  func.func @transform_2(%arg0: i32) -> (i32, i32) {
    %c0_i32 = arith.constant 0 : i32
    %c0_i32_0 = arith.constant 0 : i32
    %c0_i32_1 = arith.constant 0 : i32
    return %c0_i32, %c0_i32_0 : i32, i32
  }
  func.func @transform_3(%arg0: i32) -> (i32, i32) {
    %c0_i32 = arith.constant 0 : i32
    %c0_i32_0 = arith.constant 0 : i32
    %c0_i32_1 = arith.constant 0 : i32
    return %c0_i32, %c0_i32_0 : i32, i32
  }
  func.func @transform_4(%arg0: i32) -> (i32, i32) {
    %c0_i32 = arith.constant 0 : i32
    %c0_i32_0 = arith.constant 0 : i32
    return %c0_i32, %arg0 : i32, i32
  }
}

module attributes {stable_mosaic.version = 11 : i64} {
  func.func @_triplet_kernel(%arg0: i32, %arg1: memref<128x128xf32, #tpu.memory_space<vmem>>, %arg2: memref<4x128xf32, #tpu.memory_space<vmem>>, %arg3: memref<8x128xf32, #tpu.memory_space<vmem>>, %arg4: memref<8x1xf32, #tpu.memory_space<vmem>>, %arg5: memref<1x128xf32, #tpu.memory_space<vmem>>) attributes {dimension_semantics = [#tpu.dimension_semantics<parallel>], iteration_bounds = array<i64: 1>, scalar_prefetch = 0 : i64, scratch_operands = 0 : i64, tpu.core_type = #tpu.core_type<tc>, window_params = [{transform_indices = @transform_0, window_bounds = array<i64: 128, 128>}, {transform_indices = @transform_1, window_bounds = array<i64: 4, 128>}, {pipeline_mode = #tpu.pipeline_mode<synchronous>, transform_indices = @transform_2, window_bounds = array<i64: 8, 128>}, {pipeline_mode = #tpu.pipeline_mode<synchronous>, transform_indices = @transform_3, window_bounds = array<i64: 8, 1>}, {transform_indices = @transform_4, window_bounds = array<i64: 1, 128>}]} {
    %c0 = arith.constant 0 : index
    %c0_0 = arith.constant 0 : index
    %0 = vector.load %arg3[%c0, %c0_0] : memref<8x128xf32, #tpu.memory_space<vmem>>, vector<8x128xf32>
    %c0_1 = arith.constant 0 : index
    %c0_2 = arith.constant 0 : index
    %1 = vector.load %arg1[%c0_1, %c0_2] : memref<128x128xf32, #tpu.memory_space<vmem>>, vector<128x128xf32>
    %cst = arith.constant dense<0.000000e+00> : vector<8x128xf32>
    %2 = tpu.matmul %0, %1, %cst {dimension_numbers = #tpu.dot_dimension_numbers<[1], [1], [0], [0], [0, 0, 1, 0], [], []>} : vector<8x128xf32>, vector<128x128xf32>, vector<8x128xf32> -> vector<8x128xf32>
    %c0_3 = arith.constant 0 : index
    %c0_4 = arith.constant 0 : index
    %3 = vector.load %arg4[%c0_3, %c0_4] : memref<8x1xf32, #tpu.memory_space<vmem>>, vector<8x1xf32>
    %4 = vector.broadcast %3 : vector<8x1xf32> to vector<8x128xf32>
    %5 = arith.addf %2, %4 : vector<8x128xf32>
    %c0_5 = arith.constant 0 : index
    %c0_6 = arith.constant 0 : index
    %6 = vector.load %arg2[%c0_5, %c0_6] : memref<4x128xf32, #tpu.memory_space<vmem>>, vector<4x128xf32>
    %7 = vector.extract_strided_slice %6 {offsets = [0, 0], sizes = [1, 128], strides = [1, 1]} : vector<4x128xf32> to vector<1x128xf32>
    %8 = vector.extract_strided_slice %6 {offsets = [1, 0], sizes = [1, 128], strides = [1, 1]} : vector<4x128xf32> to vector<1x128xf32>
    %9 = vector.extract_strided_slice %6 {offsets = [2, 0], sizes = [1, 128], strides = [1, 1]} : vector<4x128xf32> to vector<1x128xf32>
    %10 = vector.extract_strided_slice %6 {offsets = [3, 0], sizes = [1, 128], strides = [1, 1]} : vector<4x128xf32> to vector<1x128xf32>
    %c128_i32 = arith.constant 128 : i32
    %11 = arith.muli %arg0, %c128_i32 : i32
    %12 = tpu.iota {dimensions = array<i32: 1>} : vector<1x128xi32>
    %13 = vector.broadcast %11 : i32 to vector<1x128xi32>
    %14 = arith.addi %13, %12 : vector<1x128xi32>
    %15 = tpu.iota {dimensions = array<i32: 0>} : vector<8x128xi32>
    %16 = vector.broadcast %7 : vector<1x128xf32> to vector<8x128xf32>
    %17 = arith.cmpf ogt, %5, %16 : vector<8x128xf32>
    %18 = vector.broadcast %14 : vector<1x128xi32> to vector<8x128xi32>
    %19 = arith.cmpi ne, %15, %18 : vector<8x128xi32>
    %20 = arith.andi %17, %19 : vector<8x128xi1>
    %cst_7 = arith.constant 0x7F800000 : f32
    %21 = vector.broadcast %cst_7 : f32 to vector<8x128xf32>
    %22 = arith.select %20, %5, %21 : vector<8x128xi1>, vector<8x128xf32>
    %cst_8 = arith.constant dense<0x7F800000> : vector<128xf32>
    %23 = vector.multi_reduction <minimumf>, %22, %cst_8 [0] : vector<8x128xf32> to vector<128xf32>
    %24 = vector.shape_cast %23 : vector<128xf32> to vector<1x128xf32>
    %25 = arith.cmpf olt, %24, %8 : vector<1x128xf32>
    %26 = arith.subf %9, %24 : vector<1x128xf32>
    %27 = arith.select %25, %26, %10 : vector<1x128xi1>, vector<1x128xf32>
    %cst_9 = arith.constant 0.000000e+00 : f32
    %28 = vector.broadcast %cst_9 : f32 to vector<1x128xf32>
    %29 = arith.maximumf %27, %28 : vector<1x128xf32>
    %c0_10 = arith.constant 0 : index
    %c0_11 = arith.constant 0 : index
    %30 = vector.load %arg5[%c0_10, %c0_11] : memref<1x128xf32, #tpu.memory_space<vmem>>, vector<1x128xf32>
    tpu.vector_store %arg5[%c0_10, %c0_11], %29 {strides = array<i32>} : memref<1x128xf32, #tpu.memory_space<vmem>>, vector<1x128xf32>,
    return
  }
  func.func @transform_0(%arg0: i32) -> (i32, i32) {
    %c0_i32 = arith.constant 0 : i32
    %c0_i32_0 = arith.constant 0 : i32
    return %arg0, %c0_i32 : i32, i32
  }
  func.func @transform_1(%arg0: i32) -> (i32, i32) {
    %c0_i32 = arith.constant 0 : i32
    %c0_i32_0 = arith.constant 0 : i32
    return %c0_i32, %arg0 : i32, i32
  }
  func.func @transform_2(%arg0: i32) -> (i32, i32) {
    %c0_i32 = arith.constant 0 : i32
    %c0_i32_0 = arith.constant 0 : i32
    %c0_i32_1 = arith.constant 0 : i32
    return %c0_i32, %c0_i32_0 : i32, i32
  }
  func.func @transform_3(%arg0: i32) -> (i32, i32) {
    %c0_i32 = arith.constant 0 : i32
    %c0_i32_0 = arith.constant 0 : i32
    %c0_i32_1 = arith.constant 0 : i32
    return %c0_i32, %c0_i32_0 : i32, i32
  }
  func.func @transform_4(%arg0: i32) -> (i32, i32) {
    %c0_i32 = arith.constant 0 : i32
    %c0_i32_0 = arith.constant 0 : i32
    return %c0_i32, %arg0 : i32, i32
  }
}

</mosaic_0001>

<bundles_post_ra>
// kernel: tpu_custom_call.1
= control target key start
LH: loop header
LB: loop body
LE: loop exit
PB: predicated region body
PF: predicated region fallthrough
CT: control target
= control target key end

     0   :  { %9 = vsyncpa [#allocation3], 0  ;;  %s324_s0 = inlined_call_operand.hbm [shape: f32[128,128], index: 0, kind: input, shape index: {}]   ;;  %s325_s1 = inlined_call_operand.vmem [shape: f32[4,128], index: 1, kind: input, shape index: {}]   ;;  %s326_s2 = inlined_call_operand.vmem [shape: f32[8,128], index: 2, kind: input, shape index: {}]   ;;  %s327_s3 = inlined_call_operand.vmem [shape: f32[8,1], index: 3, kind: input, shape index: {}]   ;;  %s328_s4 = inlined_call_operand.hbm [shape: f32[1,128], index: 4, kind: output, shape index: {}]  }
   0x1   :  { %10 = vsyncpa [#allocation4], 0  ;;  %s277_s15 = smov [#allocation2]  }
   0x2   :  { %s16_s16 = sshll.u32 %s277_s15, 4  ;;  %s17_s16 = int_to_ptr.vmem [resolvable:$true] %s16_s16 }
   0x3   :  { %s241_s17 = scalar_lea.vmem %s17_s16, 2048  ;;  %p246_p1 = scmp.lt.s32.totalorder %s17_s16, %s17_s16 }
   0x4   :  { %p242_p0 = scmp.ne.s32.totalorder %s17_s16, %s241_s17  ;;  %p247_p2 = scmp.lt.s32.totalorder %s241_s17, %s241_s17 }
   0x6   :  { %p248_p3 = por %p247_p2, %p246_p1 }
   0x8   :  { %p249_p4 = pnand %p248_p3, %p242_p0 }
   0xa   :  { %252 = shalt.err (!%p249_p4)
}
   0xb   :  { %s278_s18 = smov 128   ;;  %s279_s19 = smov 8  }
   0xc   :  { %22 = dma.hbm_to_vmem [thread:$0]  %s324_s0, 2048, %s17_s16, [#allocation3], %s278_s18, %s278_s18, %s279_s19  }
   0xd   :  { %273 = dma.done.wait [#allocation3], 2048  }
   0xe   :  { %274 = vsyncadd [#allocation3], 4294965248  ;;  %v280_v0 = vmov 0.0   ;;  %vm281_vm0 = vmmov 0   ;;  %v282_v1 = vmov 0   ;;  %v48_v2 = vld [vmem:[#allocation2 + $0x78] sm:$0xff]  ;;  %v127_v20 = vlaneseq }
   0xf   :  { %190 = vmatprep.subr.mxu0 %v280_v0  ;;  %222 = vmatprep.mubr.msk.f32.mxu0 %vm281_vm0, %v280_v0  ;;  %v47_v3 = vld [vmem:[#allocation2 + $0x70] sm:$0xff]  ;;  %v49_v4 = vld [vmem:[%s327_s3] sm:$0xff]  ;;  %v46_v5 = vld [vmem:[#allocation2 + $0x68] sm:$0xff] }
  0x10   :  { %232 = vset.pattern.permute.xlu0 %v282_v1  ;;  %191 = vmatpush3.xpose.msra.mxu0 %v48_v2  ;;  %v45_v6 = vld [vmem:[#allocation2 + $0x60] sm:$0xff]  ;;  %v44_v7 = vld [vmem:[#allocation2 + $0x58] sm:$0xff]  ;;  %v43_v8 = vld [vmem:[#allocation2 + $0x50] sm:$0xff]  ;;  %v132_v21 = vshrl.u32 %v127_v20, 7  ;;  %v128_v24 = vand.u32 127, %v127_v20 }
  0x11   :  { %192 = vmatprep.subr.mxu0 %v280_v0  ;;  %52 = vperm.xlu0 %232, %v49_v4   ;;  %v42_v9 = vld [vmem:[#allocation2 + $0x48] sm:$0xff]  ;;  %v41_v10 = vld [vmem:[#allocation2 + $0x40] sm:$0xff]  ;;  %v40_v11 = vld [vmem:[#allocation2 + $0x38] sm:$0xff] }
  0x12   :  { %v39_v12 = vld [vmem:[#allocation2 + $0x30] sm:$0xff]  ;;  %v38_v13 = vld [vmem:[#allocation2 + $0x28] sm:$0xff]  ;;  %v37_v14 = vld [vmem:[#allocation2 + $0x20] sm:$0xff]  ;;  %v135_v22 = vsub.s32 0, %v132_v21  ;;  %vm138_vm1 = vcmp.ne.s32.totalorder %v132_v21, %v128_v24 }
  0x13   :  { %v36_v15 = vld [vmem:[#allocation2 + $0x18] sm:$0xff]  ;;  %v35_v16 = vld [vmem:[#allocation2 + $0x10] sm:$0xff]  ;;  %v34_v17 = vld [vmem:[#allocation2 + $0x8] sm:$0xff] }
  0x14   :  { %193 = vmatpush3.xpose.msra.mxu0 %v47_v3  ;;  %v33_v18 = vld [vmem:[#allocation2] sm:$0xff] }
  0x15   :  { %194 = vmatprep.subr.mxu0 %v280_v0  ;;  %v32_v19 = vld [vmem:[%s326_s2] sm:$0xff] }
  0x16   :  { %v125_v23 = vld [vmem:[%s325_s1] sm:$0xf]  ;;  %s283_s1 = smov [#allocation5]  }
  0x17   :  { %v136_v26 = vrot.slane %v125_v23, %v135_v22  ;;  %v153_v38 = vrot.slane %v125_v23, 2  ;;  %s164_s2 = sshll.u32 %s283_s1, 4  ;;  %s165_s2 = int_to_ptr.vmem [resolvable:$true] %s164_s2 }
  0x18   :  { %195 = vmatpush3.xpose.msra.mxu0 %v46_v5  ;;  %s253_s26 = scalar_lea.vmem %s165_s2, 16  ;;  %s257_s27 = scalar_lea.vmem %s165_s2, 32 }
  0x19   :  { %196 = vmatprep.subr.mxu0 %v280_v0  ;;  %p254_p5 = scmp.ne.s32.totalorder %s165_s2, %s253_s26  ;;  %p258_p6 = scmp.lt.s32.totalorder %s165_s2, %s165_s2 }
  0x1a   :  { %p259_p7 = scmp.lt.s32.totalorder %s257_s27, %s253_s26 }
  0x1c   :  { %197 = vmatpush3.xpose.msra.mxu0 %v45_v6  ;;  %p260_p8 = por %p259_p7, %p258_p6 }
  0x1d   :  { %198 = vmatprep.subr.mxu0 %v280_v0 }
  0x1e   :  { %p261_p9 = pnand %p260_p8, %p254_p5 }
  0x20   :  { %199 = vmatpush3.xpose.msra.mxu0 %v44_v7 }
  0x21   :  { %200 = vmatprep.subr.mxu0 %v280_v0 }
  0x24   :  { %201 = vmatpush3.xpose.msra.mxu0 %v43_v8 }
  0x25   :  { %202 = vmatprep.subr.mxu0 %v280_v0 }
  0x28   :  { %203 = vmatpush3.xpose.msra.mxu0 %v42_v9 }
  0x29   :  { %204 = vmatprep.subr.mxu0 %v280_v0 }
  0x2c   :  { %205 = vmatpush3.xpose.msra.mxu0 %v41_v10 }
  0x2d   :  { %206 = vmatprep.subr.mxu0 %v280_v0 }
  0x30   :  { %207 = vmatpush3.xpose.msra.mxu0 %v40_v11 }
  0x31   :  { %208 = vmatprep.subr.mxu0 %v280_v0 }
  0x34   :  { %209 = vmatpush3.xpose.msra.mxu0 %v39_v12 }
  0x35   :  { %210 = vmatprep.subr.mxu0 %v280_v0 }
  0x38   :  { %211 = vmatpush3.xpose.msra.mxu0 %v38_v13 }
  0x39   :  { %212 = vmatprep.subr.mxu0 %v280_v0 }
  0x3c   :  { %213 = vmatpush3.xpose.msra.mxu0 %v37_v14 }
  0x3d   :  { %214 = vmatprep.subr.mxu0 %v280_v0 }
  0x40   :  { %215 = vmatpush3.xpose.msra.mxu0 %v36_v15 }
  0x41   :  { %216 = vmatprep.subr.mxu0 %v280_v0 }
  0x44   :  { %217 = vmatpush3.xpose.msra.mxu0 %v35_v16 }
  0x45   :  { %218 = vmatprep.subr.mxu0 %v280_v0 }
  0x48   :  { %219 = vmatpush3.xpose.msra.mxu0 %v34_v17 }
  0x49   :  { %220 = vmatprep.subr.mxu0 %v280_v0 }
  0x4c   :  { %221 = vmatpush3.xpose.msra.mxu0 %v33_v18 }
  0x4f   :  { %223 = vmatmul.mubr.f32.vlgmr.msra.gmra.mxu0 %v32_v19 }
  0x8c   :  { %v53_v25 = vpop.permute.xlu0 %52 }
 0x10f   :  { %v121_v27 = vpop.f32.mrf.mxu0 }
 0x110   :  { %v122_v28 = vadd.f32 %v121_v27, %v53_v25 }
 0x111   :  { %v224_v29 = vpop.f32.mrf.mxu0 }
 0x112   :  { %vm137_vm2 = vcmp.gt.f32.partialorder %v122_v28, %v136_v26 }
 0x113   :  { %vm139_vm3 = vmand %vm137_vm2, %vm138_vm1 }
 0x114   :  { %v140_v30 = vsel %vm139_vm3, %v122_v28, inf }
 0x115   :  { %v141_v31 = vrot.slane %v140_v30, 4 }
 0x117   :  { %v142_v32 = vmin.f32 %v140_v30, %v141_v31 }
 0x119   :  { %v143_v33 = vrot.slane %v142_v32, 2 }
 0x11b   :  { %v144_v34 = vmin.f32 %v142_v32, %v143_v33 }
 0x11d   :  { %v145_v35 = vrot.slane %v144_v34, 1 }
 0x11f   :  { %v146_v36 = vmin.f32 %v144_v34, %v145_v35 }
 0x121   :  { %v148_v37 = vsub.f32 %v125_v23, %v146_v36  ;;  %vm147_vm4 = vcmp.lt.f32.partialorder %v146_v36, %v125_v23 }
 0x123   :  { %v150_v39 = vrot.slane %v148_v37, 1 }
 0x125   :  { %v155_v40 = vsel %vm147_vm4, %v150_v39, %v153_v38 }
 0x126   :  { %v156_v41 = vmax.f32 %v155_v40, 0.0 }
 0x128   :  { %157 = vst [vmem:[#allocation5 - $0x1] sm:$0x2] %v156_v41 }
 0x129   :  { %264 = shalt.err (!%p261_p9)
}
 0x12a   :  { %167 = dma.vmem_to_hbm [thread:$0]  %s165_s2, 16, %s328_s4, [#allocation4]  }
 0x12b   :  { %275 = dma.done.wait [#allocation4], 16  }
 0x12c   :  { %276 = vsyncadd [#allocation4], 4294967280 }
 0x12d   :  { %171 = vsyncpa [#allocation3], 1 }
 0x12e   :  { %172 = vsyncpa [#allocation4], 1 }

// kernel: tpu_custom_call.1
= control target key start
LH: loop header
LB: loop body
LE: loop exit
PB: predicated region body
PF: predicated region fallthrough
CT: control target
= control target key end

     0   :  { %9 = vsyncpa [#allocation3], 0  ;;  %s324_s0 = inlined_call_operand.hbm [shape: f32[128,128], index: 0, kind: input, shape index: {}]   ;;  %s325_s1 = inlined_call_operand.vmem [shape: f32[4,128], index: 1, kind: input, shape index: {}]   ;;  %s326_s2 = inlined_call_operand.vmem [shape: f32[8,128], index: 2, kind: input, shape index: {}]   ;;  %s327_s3 = inlined_call_operand.vmem [shape: f32[8,1], index: 3, kind: input, shape index: {}]   ;;  %s328_s4 = inlined_call_operand.hbm [shape: f32[1,128], index: 4, kind: output, shape index: {}]  }
   0x1   :  { %10 = vsyncpa [#allocation4], 0  ;;  %s277_s15 = smov [#allocation2]  }
   0x2   :  { %s16_s16 = sshll.u32 %s277_s15, 4  ;;  %s17_s16 = int_to_ptr.vmem [resolvable:$true] %s16_s16 }
   0x3   :  { %s241_s17 = scalar_lea.vmem %s17_s16, 2048  ;;  %p246_p1 = scmp.lt.s32.totalorder %s17_s16, %s17_s16 }
   0x4   :  { %p242_p0 = scmp.ne.s32.totalorder %s17_s16, %s241_s17  ;;  %p247_p2 = scmp.lt.s32.totalorder %s241_s17, %s241_s17 }
   0x6   :  { %p248_p3 = por %p247_p2, %p246_p1 }
   0x8   :  { %p249_p4 = pnand %p248_p3, %p242_p0 }
   0xa   :  { %252 = shalt.err (!%p249_p4)
}
   0xb   :  { %s278_s18 = smov 128   ;;  %s279_s19 = smov 8  }
   0xc   :  { %22 = dma.hbm_to_vmem [thread:$0]  %s324_s0, 2048, %s17_s16, [#allocation3], %s278_s18, %s278_s18, %s279_s19  }
   0xd   :  { %273 = dma.done.wait [#allocation3], 2048  }
   0xe   :  { %274 = vsyncadd [#allocation3], 4294965248  ;;  %v280_v0 = vmov 0.0   ;;  %vm281_vm0 = vmmov 0   ;;  %v282_v1 = vmov 0   ;;  %v48_v2 = vld [vmem:[#allocation2 + $0x78] sm:$0xff]  ;;  %v127_v20 = vlaneseq }
   0xf   :  { %190 = vmatprep.subr.mxu0 %v280_v0  ;;  %222 = vmatprep.mubr.msk.f32.mxu0 %vm281_vm0, %v280_v0  ;;  %v47_v3 = vld [vmem:[#allocation2 + $0x70] sm:$0xff]  ;;  %v49_v4 = vld [vmem:[%s327_s3] sm:$0xff]  ;;  %v46_v5 = vld [vmem:[#allocation2 + $0x68] sm:$0xff] }
  0x10   :  { %232 = vset.pattern.permute.xlu0 %v282_v1  ;;  %191 = vmatpush3.xpose.msra.mxu0 %v48_v2  ;;  %v45_v6 = vld [vmem:[#allocation2 + $0x60] sm:$0xff]  ;;  %v44_v7 = vld [vmem:[#allocation2 + $0x58] sm:$0xff]  ;;  %v43_v8 = vld [vmem:[#allocation2 + $0x50] sm:$0xff]  ;;  %v132_v21 = vshrl.u32 %v127_v20, 7  ;;  %v128_v24 = vand.u32 127, %v127_v20 }
  0x11   :  { %192 = vmatprep.subr.mxu0 %v280_v0  ;;  %52 = vperm.xlu0 %232, %v49_v4   ;;  %v42_v9 = vld [vmem:[#allocation2 + $0x48] sm:$0xff]  ;;  %v41_v10 = vld [vmem:[#allocation2 + $0x40] sm:$0xff]  ;;  %v40_v11 = vld [vmem:[#allocation2 + $0x38] sm:$0xff] }
  0x12   :  { %v39_v12 = vld [vmem:[#allocation2 + $0x30] sm:$0xff]  ;;  %v38_v13 = vld [vmem:[#allocation2 + $0x28] sm:$0xff]  ;;  %v37_v14 = vld [vmem:[#allocation2 + $0x20] sm:$0xff]  ;;  %v135_v22 = vsub.s32 0, %v132_v21  ;;  %vm138_vm1 = vcmp.ne.s32.totalorder %v132_v21, %v128_v24 }
  0x13   :  { %v36_v15 = vld [vmem:[#allocation2 + $0x18] sm:$0xff]  ;;  %v35_v16 = vld [vmem:[#allocation2 + $0x10] sm:$0xff]  ;;  %v34_v17 = vld [vmem:[#allocation2 + $0x8] sm:$0xff] }
  0x14   :  { %193 = vmatpush3.xpose.msra.mxu0 %v47_v3  ;;  %v33_v18 = vld [vmem:[#allocation2] sm:$0xff] }
  0x15   :  { %194 = vmatprep.subr.mxu0 %v280_v0  ;;  %v32_v19 = vld [vmem:[%s326_s2] sm:$0xff] }
  0x16   :  { %v125_v23 = vld [vmem:[%s325_s1] sm:$0xf]  ;;  %s283_s1 = smov [#allocation5]  }
  0x17   :  { %v136_v26 = vrot.slane %v125_v23, %v135_v22  ;;  %v153_v38 = vrot.slane %v125_v23, 2  ;;  %s164_s2 = sshll.u32 %s283_s1, 4  ;;  %s165_s2 = int_to_ptr.vmem [resolvable:$true] %s164_s2 }
  0x18   :  { %195 = vmatpush3.xpose.msra.mxu0 %v46_v5  ;;  %s253_s26 = scalar_lea.vmem %s165_s2, 16  ;;  %s257_s27 = scalar_lea.vmem %s165_s2, 32 }
  0x19   :  { %196 = vmatprep.subr.mxu0 %v280_v0  ;;  %p254_p5 = scmp.ne.s32.totalorder %s165_s2, %s253_s26  ;;  %p258_p6 = scmp.lt.s32.totalorder %s165_s2, %s165_s2 }
  0x1a   :  { %p259_p7 = scmp.lt.s32.totalorder %s257_s27, %s253_s26 }
  0x1c   :  { %197 = vmatpush3.xpose.msra.mxu0 %v45_v6  ;;  %p260_p8 = por %p259_p7, %p258_p6 }
  0x1d   :  { %198 = vmatprep.subr.mxu0 %v280_v0 }
  0x1e   :  { %p261_p9 = pnand %p260_p8, %p254_p5 }
  0x20   :  { %199 = vmatpush3.xpose.msra.mxu0 %v44_v7 }
  0x21   :  { %200 = vmatprep.subr.mxu0 %v280_v0 }
  0x24   :  { %201 = vmatpush3.xpose.msra.mxu0 %v43_v8 }
  0x25   :  { %202 = vmatprep.subr.mxu0 %v280_v0 }
  0x28   :  { %203 = vmatpush3.xpose.msra.mxu0 %v42_v9 }
  0x29   :  { %204 = vmatprep.subr.mxu0 %v280_v0 }
  0x2c   :  { %205 = vmatpush3.xpose.msra.mxu0 %v41_v10 }
  0x2d   :  { %206 = vmatprep.subr.mxu0 %v280_v0 }
  0x30   :  { %207 = vmatpush3.xpose.msra.mxu0 %v40_v11 }
  0x31   :  { %208 = vmatprep.subr.mxu0 %v280_v0 }
  0x34   :  { %209 = vmatpush3.xpose.msra.mxu0 %v39_v12 }
  0x35   :  { %210 = vmatprep.subr.mxu0 %v280_v0 }
  0x38   :  { %211 = vmatpush3.xpose.msra.mxu0 %v38_v13 }
  0x39   :  { %212 = vmatprep.subr.mxu0 %v280_v0 }
  0x3c   :  { %213 = vmatpush3.xpose.msra.mxu0 %v37_v14 }
  0x3d   :  { %214 = vmatprep.subr.mxu0 %v280_v0 }
  0x40   :  { %215 = vmatpush3.xpose.msra.mxu0 %v36_v15 }
  0x41   :  { %216 = vmatprep.subr.mxu0 %v280_v0 }
  0x44   :  { %217 = vmatpush3.xpose.msra.mxu0 %v35_v16 }
  0x45   :  { %218 = vmatprep.subr.mxu0 %v280_v0 }
  0x48   :  { %219 = vmatpush3.xpose.msra.mxu0 %v34_v17 }
  0x49   :  { %220 = vmatprep.subr.mxu0 %v280_v0 }
  0x4c   :  { %221 = vmatpush3.xpose.msra.mxu0 %v33_v18 }
  0x4f   :  { %223 = vmatmul.mubr.f32.vlgmr.msra.gmra.mxu0 %v32_v19 }
  0x8c   :  { %v53_v25 = vpop.permute.xlu0 %52 }
 0x10f   :  { %v121_v27 = vpop.f32.mrf.mxu0 }
 0x110   :  { %v122_v28 = vadd.f32 %v121_v27, %v53_v25 }
 0x111   :  { %v224_v29 = vpop.f32.mrf.mxu0 }
 0x112   :  { %vm137_vm2 = vcmp.gt.f32.partialorder %v122_v28, %v136_v26 }
 0x113   :  { %vm139_vm3 = vmand %vm137_vm2, %vm138_vm1 }
 0x114   :  { %v140_v30 = vsel %vm139_vm3, %v122_v28, inf }
 0x115   :  { %v141_v31 = vrot.slane %v140_v30, 4 }
 0x117   :  { %v142_v32 = vmin.f32 %v140_v30, %v141_v31 }
 0x119   :  { %v143_v33 = vrot.slane %v142_v32, 2 }
 0x11b   :  { %v144_v34 = vmin.f32 %v142_v32, %v143_v33 }
 0x11d   :  { %v145_v35 = vrot.slane %v144_v34, 1 }
 0x11f   :  { %v146_v36 = vmin.f32 %v144_v34, %v145_v35 }
 0x121   :  { %v148_v37 = vsub.f32 %v125_v23, %v146_v36  ;;  %vm147_vm4 = vcmp.lt.f32.partialorder %v146_v36, %v125_v23 }
 0x123   :  { %v150_v39 = vrot.slane %v148_v37, 1 }
 0x125   :  { %v155_v40 = vsel %vm147_vm4, %v150_v39, %v153_v38 }
 0x126   :  { %v156_v41 = vmax.f32 %v155_v40, 0.0 }
 0x128   :  { %157 = vst [vmem:[#allocation5 - $0x1] sm:$0x2] %v156_v41 }
 0x129   :  { %264 = shalt.err (!%p261_p9)
}
 0x12a   :  { %167 = dma.vmem_to_hbm [thread:$0]  %s165_s2, 16, %s328_s4, [#allocation4]  }
 0x12b   :  { %275 = dma.done.wait [#allocation4], 16  }
 0x12c   :  { %276 = vsyncadd [#allocation4], 4294967280 }
 0x12d   :  { %171 = vsyncpa [#allocation3], 1 }
 0x12e   :  { %172 = vsyncpa [#allocation4], 1 }

</bundles_post_ra>
